<compile_context>
chip_gen: v6e
topology: v6e:2x2x1
jax: 0.10.0
libtpu: 0.0.40
codegen_flags: <defaults>
</compile_context>

<pallas_src>
import functools
import math

import jax
import jax.numpy as jnp
from jax import lax
from jax.experimental import pallas as pl
from jax.experimental.pallas import tpu as pltpu


def _round_up(v, m):
    return -(-v // m) * m


def _num_tensorcores():
    """Best-effort query of TensorCores per chip (v7x has 2).  Defaults to 1."""
    try:
        info = pltpu.get_tpu_info()
        for attr in ("num_cores", "tensorcores_per_chip", "num_tensorcores",
                     "core_count", "num_tensor_cores"):
            v = getattr(info, attr, None)
            if isinstance(v, int) and v > 0:
                return v
    except Exception:
        pass
    return 1


# ----------------------------------------------------------------------------
# Fused kernel: LayerNorm (per feat_dim chunk) + 3x(Linear+ReLU) + fused heads.
# ----------------------------------------------------------------------------
def _actor_fused_kernel(x_ref, avg_ref, g_ref, bln_ref,
                        w1_ref, b1_ref, w2_ref, b2_ref, w3_ref, b3_ref,
                        wh_ref, bh_ref, out_ref, *, n_policy):
    # --- LayerNorm over each feat_dim chunk of the flattened row (f32 stats).
    # Two independent MXU pushes (no dot -> VPU -> dot serial chain).
    x = x_ref[...].astype(jnp.float32)
    avg = avg_ref[...]                                    # chunk-averaging matrix
    mean = jnp.dot(x, avg, preferred_element_type=jnp.float32)
    sq = jnp.dot(x * x, avg, preferred_element_type=jnp.float32)
    var = jnp.maximum(sq - mean * mean, 0.0)              # guard tiny cancellation
    xn = (x - mean) * lax.rsqrt(var + 1e-5)               # PyTorch LayerNorm eps
    xn = xn * g_ref[...] + bln_ref[...]

    # --- 3-layer ReLU MLP: bf16 MXU inputs, f32 accumulation, f32 elementwise.
    h = jnp.dot(xn.astype(jnp.bfloat16), w1_ref[...],
                preferred_element_type=jnp.float32)
    h = jnp.maximum(h + b1_ref[...], 0.0)
    h = jnp.dot(h.astype(jnp.bfloat16), w2_ref[...],
                preferred_element_type=jnp.float32)
    h = jnp.maximum(h + b2_ref[...], 0.0)
    h = jnp.dot(h.astype(jnp.bfloat16), w3_ref[...],
                preferred_element_type=jnp.float32)
    h = jnp.maximum(h + b3_ref[...], 0.0)

    # --- fused heads: [policy (n_policy) | pred (24) | zero pad] -> 128 lanes.
    logits = jnp.dot(h.astype(jnp.bfloat16), wh_ref[...],
                     preferred_element_type=jnp.float32) + bh_ref[...]
    col = lax.broadcasted_iota(jnp.int32, logits.shape, 1)
    is_pol = col < n_policy
    pol_logits = jnp.where(is_pol, logits, -jnp.inf)
    m = jnp.max(pol_logits, axis=-1, keepdims=True)
    e = jnp.exp(pol_logits - m)                           # pad lanes -> exp(-inf) = 0
    denom = jnp.sum(e, axis=-1, keepdims=True)
    policy = e * pl.reciprocal(denom, approx=True)        # EUP vrcp slot
    # Single lane-dense unmasked store: policy probs, then raw pred logits.
    out_ref[...] = jnp.where(is_pol, policy, logits).astype(out_ref.dtype)


# ----------------------------------------------------------------------------
# One-time parameter packing (hoisted out of the per-call path).
# ----------------------------------------------------------------------------
def pack_params(params, input_dim):
    feat_dim = input_dim[1]
    n_chunks = input_dim[0]
    flat_dim = n_chunks * feat_dim
    H = params["w1"].shape[1]
    n_pol = params["wpol"].shape[1]
    n_pred = params["wpred"].shape[1]
    head_pad = max(128, _round_up(n_pol + n_pred, 128))   # lane-dense head output

    # Block-averaging matrix: per-feat_dim-chunk mean with one tiny MXU matmul.
    # TODO(synk): for flat_dim >~ 512 switch LN stats to a (flat_dim, n_chunks)
    # reduce-matmul + broadcast instead of this quadratic averaging matrix.
    chunk_id = jnp.arange(flat_dim) // feat_dim
    avg = (chunk_id[:, None] == chunk_id[None, :]).astype(jnp.float32) / feat_dim

    # LayerNorm affine params broadcast to the flat row (tiled n_chunks times).
    g_flat = jnp.tile(params["ln_gamma"], n_chunks).reshape(1, flat_dim)
    bln_flat = jnp.tile(params["ln_beta"], n_chunks).reshape(1, flat_dim)

    # Fuse the two heads into one zero-padded, 128-lane bf16 weight / f32 bias.
    wh = jnp.zeros((H, head_pad), jnp.float32)
    wh = wh.at[:, :n_pol].set(params["wpol"])
    wh = wh.at[:, n_pol:n_pol + n_pred].set(params["wpred"])
    bh = jnp.zeros((1, head_pad), jnp.float32)
    bh = bh.at[0, :n_pol].set(params["bpol"])
    bh = bh.at[0, n_pol:n_pol + n_pred].set(params["bpred"])

    return {
        "avg": avg,
        "g_flat": g_flat,
        "bln_flat": bln_flat,
        "w1": params["w1"].astype(jnp.bfloat16),
        "b1": params["b1"].reshape(1, H).astype(jnp.float32),
        "w2": params["w2"].astype(jnp.bfloat16),
        "b2": params["b2"].reshape(1, H).astype(jnp.float32),
        "w3": params["w3"].astype(jnp.bfloat16),
        "b3": params["b3"].reshape(1, H).astype(jnp.float32),
        "wh": wh.astype(jnp.bfloat16),
        "bh": bh,
        "n_pol": n_pol,
        "n_pred": n_pred,
        "head_pad": head_pad,
        "flat_dim": flat_dim,
    }


# ----------------------------------------------------------------------------
# ActorNet forward (Pallas-backed).  Reshapes are JAX glue; no input padding.
# ----------------------------------------------------------------------------
def actor_net_forward(x, h_n, num_meta, packed, *, agent_dim, tile_m=2048):
    flat_dim = packed["flat_dim"]
    n_pol = packed["n_pol"]
    n_pred = packed["n_pred"]
    head_pad = packed["head_pad"]

    xf = x.reshape(-1, flat_dim).astype(jnp.float32)
    M = xf.shape[0]

    # Row tiling: multiple of 8 sublanes, no HBM pad copy (ragged tail tile is
    # masked on writeback by Pallas; rows are independent so garbage tail rows
    # never reach valid output rows).
    tm = min(tile_m, max(8, _round_up(M, 8)))
    n_cores = _num_tensorcores()
    if n_cores > 1:
        # v7x: keep >= n_cores grid steps so every TensorCore gets work.
        tm = min(tm, max(8, _round_up(pl.cdiv(M, n_cores), 8)))
    grid = (pl.cdiv(M, tm),)

    args = (
        xf, packed["avg"], packed["g_flat"], packed["bln_flat"],
        packed["w1"], packed["b1"], packed["w2"], packed["b2"],
        packed["w3"], packed["b3"], packed["wh"], packed["bh"],
    )

    row_spec = pl.BlockSpec((tm, flat_dim), lambda i: (i, 0))
    const_spec = lambda a: pl.BlockSpec(a.shape, lambda i: (0, 0))
    in_specs = [row_spec] + [const_spec(a) for a in args[1:]]

    out = pl.pallas_call(
        functools.partial(_actor_fused_kernel, n_policy=n_pol),
        grid=grid,
        out_shape=jax.ShapeDtypeStruct((M, head_pad), jnp.float32),
        in_specs=in_specs,
        out_specs=pl.BlockSpec((tm, head_pad), lambda i: (i, 0)),
        compiler_params=pltpu.CompilerParams(
            dimension_semantics=("parallel",),        # megacore-shard row tiles
            vmem_limit_bytes=48 * 1024 * 1024),       # covers tm=2048 everywhere
    )(*args)

    G = agent_dim * num_meta
    policy = out[:, :n_pol].reshape(-1, G, n_pol)
    pred = out[:, n_pol:n_pol + n_pred].reshape(-1, G, n_pred)
    return policy, pred, h_n


# ----------------------------------------------------------------------------
# Parameter construction (orthogonal init with ReLU gain, zero biases — mirrors
# init_() in the PyTorch module; LayerNorm default ones/zeros).
# ----------------------------------------------------------------------------
def make_params(key, input_dim, output_dim, hidden_dim):
    feat_dim = input_dim[1]
    flat_dim = input_dim[0] * input_dim[1]
    gain = math.sqrt(2.0)  # nn.init.calculate_gain('relu')
    ortho = jax.nn.initializers.orthogonal(scale=gain)
    keys = jax.random.split(key, 5)

    return {
        "ln_gamma": jnp.ones((feat_dim,), jnp.float32),
        "ln_beta": jnp.zeros((feat_dim,), jnp.float32),
        "w1": ortho(keys[0], (flat_dim, hidden_dim), jnp.float32),
        "b1": jnp.zeros((hidden_dim,), jnp.float32),
        "w2": ortho(keys[1], (hidden_dim, hidden_dim), jnp.float32),
        "b2": jnp.zeros((hidden_dim,), jnp.float32),
        "w3": ortho(keys[2], (hidden_dim, hidden_dim), jnp.float32),
        "b3": jnp.zeros((hidden_dim,), jnp.float32),
        "wpol": ortho(keys[3], (hidden_dim, output_dim), jnp.float32),
        "bpol": jnp.zeros((output_dim,), jnp.float32),
        "wpred": ortho(keys[4], (hidden_dim, 24), jnp.float32),
        "bpred": jnp.zeros((24,), jnp.float32),
    }


# ----------------------------------------------------------------------------
# Pure-JAX reference for validation (full f32, exact LayerNorm / softmax).
# ----------------------------------------------------------------------------
def actor_net_reference(x, h_n, num_meta, params, *, input_dim, agent_dim):
    feat_dim = input_dim[1]
    flat_dim = input_dim[0] * input_dim[1]
    x2 = x.reshape(-1, feat_dim).astype(jnp.float32)
    mean = jnp.mean(x2, axis=-1, keepdims=True)
    var = jnp.mean((x2 - mean) ** 2, axis=-1, keepdims=True)
    xn = (x2 - mean) / jnp.sqrt(var + 1e-5) * params["ln_gamma"] + params["ln_beta"]
    xf = xn.reshape(-1, flat_dim)
    h = jax.nn.relu(xf @ params["w1"] + params["b1"])
    h = jax.nn.relu(h @ params["w2"] + params["b2"])
    h = jax.nn.relu(h @ params["w3"] + params["b3"])
    policy = jax.nn.softmax(h @ params["wpol"] + params["bpol"], axis=-1)
    pred = h @ params["wpred"] + params["bpred"]
    G = agent_dim * num_meta
    return (policy.reshape(-1, G, policy.shape[-1]),
            pred.reshape(-1, G, pred.shape[-1]),
            h_n)


if __name__ == "__main__":
    # Small, module-consistent shapes (hidden_dim matches the module default of 128).
    input_dim = (4, 8)     # -> feat_dim=8, flat_dim=32
    output_dim = 5
    agent_dim = 2
    num_meta = 2
    hidden_dim = 128
    batch = 2

    key = jax.random.PRNGKey(0)
    kx, kh, kp = jax.random.split(key, 3)

    # x: (batch, agent_dim*num_meta, input_dim[0], feat_dim)
    x = jax.random.normal(
        kx, (batch, agent_dim * num_meta, input_dim[0], input_dim[1]),
        dtype=jnp.float32)
    # h_n is passed through untouched by the module.
    h_n = jax.random.normal(kh, (1, batch, hidden_dim), dtype=jnp.float32)

    params = make_params(kp, input_dim, output_dim, hidden_dim)
    packed = pack_params(params, input_dim)   # one-time packing, out of call path

    policy, pred, h_out = actor_net_forward(
        x, h_n, num_meta, packed, agent_dim=agent_dim)
    jax.block_until_ready((policy, pred, h_out))

    # Validate against the pure-f32 reference (tolerances account for bf16 MXU
    # inputs and the approx reciprocal).
    policy_ref, pred_ref, _ = actor_net_reference(
        x, h_n, num_meta, params, input_dim=input_dim, agent_dim=agent_dim)
    assert policy.shape == (batch, agent_dim * num_meta, output_dim)
    assert pred.shape == (batch, agent_dim * num_meta, 24)
    assert jnp.allclose(policy, policy_ref, atol=3e-2)
    assert jnp.allclose(pred, pred_ref, atol=1e-1, rtol=5e-2)
    assert jnp.array_equal(h_out, h_n)

    print("KERNEL_OK")
</pallas_src>

<mosaic_0001>
module attributes {stable_mosaic.version = 11 : i64} {
  func.func @_actor_fused_kernel(%arg0: i32, %arg1: memref<8x32xf32, #tpu.memory_space<vmem>>, %arg2: memref<32x32xf32, #tpu.memory_space<vmem>>, %arg3: memref<1x32xf32, #tpu.memory_space<vmem>>, %arg4: memref<1x32xf32, #tpu.memory_space<vmem>>, %arg5: memref<32x128xbf16, #tpu.memory_space<vmem>>, %arg6: memref<1x128xf32, #tpu.memory_space<vmem>>, %arg7: memref<128x128xbf16, #tpu.memory_space<vmem>>, %arg8: memref<1x128xf32, #tpu.memory_space<vmem>>, %arg9: memref<128x128xbf16, #tpu.memory_space<vmem>>, %arg10: memref<1x128xf32, #tpu.memory_space<vmem>>, %arg11: memref<128x128xbf16, #tpu.memory_space<vmem>>, %arg12: memref<1x128xf32, #tpu.memory_space<vmem>>, %arg13: memref<8x128xf32, #tpu.memory_space<vmem>>) attributes {dimension_semantics = [#tpu.dimension_semantics<parallel>], iteration_bounds = array<i64: 1>, scalar_prefetch = 0 : i64, scratch_operands = 0 : i64, tpu.core_type = #tpu.core_type<tc>, window_params = [{transform_indices = @transform_0, window_bounds = array<i64: 8, 32>}, {pipeline_mode = #tpu.pipeline_mode<synchronous>, transform_indices = @transform_1, window_bounds = array<i64: 32, 32>}, {pipeline_mode = #tpu.pipeline_mode<synchronous>, transform_indices = @transform_2, window_bounds = array<i64: 1, 32>}, {pipeline_mode = #tpu.pipeline_mode<synchronous>, transform_indices = @transform_3, window_bounds = array<i64: 1, 32>}, {pipeline_mode = #tpu.pipeline_mode<synchronous>, transform_indices = @transform_4, window_bounds = array<i64: 32, 128>}, {pipeline_mode = #tpu.pipeline_mode<synchronous>, transform_indices = @transform_5, window_bounds = array<i64: 1, 128>}, {pipeline_mode = #tpu.pipeline_mode<synchronous>, transform_indices = @transform_6, window_bounds = array<i64: 128, 128>}, {pipeline_mode = #tpu.pipeline_mode<synchronous>, transform_indices = @transform_7, window_bounds = array<i64: 1, 128>}, {pipeline_mode = #tpu.pipeline_mode<synchronous>, transform_indices = @transform_8, window_bounds = array<i64: 128, 128>}, {pipeline_mode = #tpu.pipeline_mode<synchronous>, transform_indices = @transform_9, window_bounds = array<i64: 1, 128>}, {pipeline_mode = #tpu.pipeline_mode<synchronous>, transform_indices = @transform_10, window_bounds = array<i64: 128, 128>}, {pipeline_mode = #tpu.pipeline_mode<synchronous>, transform_indices = @transform_11, window_bounds = array<i64: 1, 128>}, {transform_indices = @transform_12, window_bounds = array<i64: 8, 128>}]} {
    %c0 = arith.constant 0 : index
    %c0_0 = arith.constant 0 : index
    %0 = vector.load %arg1[%c0, %c0_0] : memref<8x32xf32, #tpu.memory_space<vmem>>, vector<8x32xf32>
    %c0_1 = arith.constant 0 : index
    %c0_2 = arith.constant 0 : index
    %1 = vector.load %arg2[%c0_1, %c0_2] : memref<32x32xf32, #tpu.memory_space<vmem>>, vector<32x32xf32>
    %cst = arith.constant dense<0.000000e+00> : vector<8x32xf32>
    %2 = tpu.matmul %0, %1, %cst {dimension_numbers = #tpu.dot_dimension_numbers<[1], [0], [0], [1], [0, 0, 1, 1], [], []>} : vector<8x32xf32>, vector<32x32xf32>, vector<8x32xf32> -> vector<8x32xf32>
    %3 = arith.mulf %0, %0 : vector<8x32xf32>
    %cst_3 = arith.constant dense<0.000000e+00> : vector<8x32xf32>
    %4 = tpu.matmul %3, %1, %cst_3 {dimension_numbers = #tpu.dot_dimension_numbers<[1], [0], [0], [1], [0, 0, 1, 1], [], []>} : vector<8x32xf32>, vector<32x32xf32>, vector<8x32xf32> -> vector<8x32xf32>
    %5 = arith.mulf %2, %2 : vector<8x32xf32>
    %6 = arith.subf %4, %5 : vector<8x32xf32>
    %cst_4 = arith.constant 0.000000e+00 : f32
    %7 = vector.broadcast %cst_4 : f32 to vector<8x32xf32>
    %8 = arith.maximumf %6, %7 : vector<8x32xf32>
    %9 = arith.subf %0, %2 : vector<8x32xf32>
    %cst_5 = arith.constant 9.99999974E-6 : f32
    %10 = vector.broadcast %cst_5 : f32 to vector<8x32xf32>
    %11 = arith.addf %8, %10 : vector<8x32xf32>
    %12 = math.rsqrt %11 : vector<8x32xf32>
    %13 = arith.mulf %9, %12 : vector<8x32xf32>
    %c0_6 = arith.constant 0 : index
    %c0_7 = arith.constant 0 : index
    %14 = vector.load %arg3[%c0_6, %c0_7] : memref<1x32xf32, #tpu.memory_space<vmem>>, vector<1x32xf32>
    %15 = vector.broadcast %14 : vector<1x32xf32> to vector<8x32xf32>
    %16 = arith.mulf %13, %15 : vector<8x32xf32>
    %c0_8 = arith.constant 0 : index
    %c0_9 = arith.constant 0 : index
    %17 = vector.load %arg4[%c0_8, %c0_9] : memref<1x32xf32, #tpu.memory_space<vmem>>, vector<1x32xf32>
    %18 = vector.broadcast %17 : vector<1x32xf32> to vector<8x32xf32>
    %19 = arith.addf %16, %18 : vector<8x32xf32>
    %20 = arith.truncf %19 : vector<8x32xf32> to vector<8x32xbf16>
    %c0_10 = arith.constant 0 : index
    %c0_11 = arith.constant 0 : index
    %21 = vector.load %arg5[%c0_10, %c0_11] : memref<32x128xbf16, #tpu.memory_space<vmem>>, vector<32x128xbf16>
    %cst_12 = arith.constant dense<0.000000e+00> : vector<8x128xf32>
    %22 = tpu.matmul %20, %21, %cst_12 {dimension_numbers = #tpu.dot_dimension_numbers<[1], [0], [0], [1], [0, 0, 1, 1], [], []>} : vector<8x32xbf16>, vector<32x128xbf16>, vector<8x128xf32> -> vector<8x128xf32>
    %c0_13 = arith.constant 0 : index
    %c0_14 = arith.constant 0 : index
    %23 = vector.load %arg6[%c0_13, %c0_14] : memref<1x128xf32, #tpu.memory_space<vmem>>, vector<1x128xf32>
    %24 = vector.broadcast %23 : vector<1x128xf32> to vector<8x128xf32>
    %25 = arith.addf %22, %24 : vector<8x128xf32>
    %cst_15 = arith.constant 0.000000e+00 : f32
    %26 = vector.broadcast %cst_15 : f32 to vector<8x128xf32>
    %27 = arith.maximumf %25, %26 : vector<8x128xf32>
    %28 = arith.truncf %27 : vector<8x128xf32> to vector<8x128xbf16>
    %c0_16 = arith.constant 0 : index
    %c0_17 = arith.constant 0 : index
    %29 = vector.load %arg7[%c0_16, %c0_17] : memref<128x128xbf16, #tpu.memory_space<vmem>>, vector<128x128xbf16>
    %cst_18 = arith.constant dense<0.000000e+00> : vector<8x128xf32>
    %30 = tpu.matmul %28, %29, %cst_18 {dimension_numbers = #tpu.dot_dimension_numbers<[1], [0], [0], [1], [0, 0, 1, 1], [], []>} : vector<8x128xbf16>, vector<128x128xbf16>, vector<8x128xf32> -> vector<8x128xf32>
    %c0_19 = arith.constant 0 : index
    %c0_20 = arith.constant 0 : index
    %31 = vector.load %arg8[%c0_19, %c0_20] : memref<1x128xf32, #tpu.memory_space<vmem>>, vector<1x128xf32>
    %32 = vector.broadcast %31 : vector<1x128xf32> to vector<8x128xf32>
    %33 = arith.addf %30, %32 : vector<8x128xf32>
    %cst_21 = arith.constant 0.000000e+00 : f32
    %34 = vector.broadcast %cst_21 : f32 to vector<8x128xf32>
    %35 = arith.maximumf %33, %34 : vector<8x128xf32>
    %36 = arith.truncf %35 : vector<8x128xf32> to vector<8x128xbf16>
    %c0_22 = arith.constant 0 : index
    %c0_23 = arith.constant 0 : index
    %37 = vector.load %arg9[%c0_22, %c0_23] : memref<128x128xbf16, #tpu.memory_space<vmem>>, vector<128x128xbf16>
    %cst_24 = arith.constant dense<0.000000e+00> : vector<8x128xf32>
    %38 = tpu.matmul %36, %37, %cst_24 {dimension_numbers = #tpu.dot_dimension_numbers<[1], [0], [0], [1], [0, 0, 1, 1], [], []>} : vector<8x128xbf16>, vector<128x128xbf16>, vector<8x128xf32> -> vector<8x128xf32>
    %c0_25 = arith.constant 0 : index
    %c0_26 = arith.constant 0 : index
    %39 = vector.load %arg10[%c0_25, %c0_26] : memref<1x128xf32, #tpu.memory_space<vmem>>, vector<1x128xf32>
    %40 = vector.broadcast %39 : vector<1x128xf32> to vector<8x128xf32>
    %41 = arith.addf %38, %40 : vector<8x128xf32>
    %cst_27 = arith.constant 0.000000e+00 : f32
    %42 = vector.broadcast %cst_27 : f32 to vector<8x128xf32>
    %43 = arith.maximumf %41, %42 : vector<8x128xf32>
    %44 = arith.truncf %43 : vector<8x128xf32> to vector<8x128xbf16>
    %c0_28 = arith.constant 0 : index
    %c0_29 = arith.constant 0 : index
    %45 = vector.load %arg11[%c0_28, %c0_29] : memref<128x128xbf16, #tpu.memory_space<vmem>>, vector<128x128xbf16>
    %cst_30 = arith.constant dense<0.000000e+00> : vector<8x128xf32>
    %46 = tpu.matmul %44, %45, %cst_30 {dimension_numbers = #tpu.dot_dimension_numbers<[1], [0], [0], [1], [0, 0, 1, 1], [], []>} : vector<8x128xbf16>, vector<128x128xbf16>, vector<8x128xf32> -> vector<8x128xf32>
    %c0_31 = arith.constant 0 : index
    %c0_32 = arith.constant 0 : index
    %47 = vector.load %arg12[%c0_31, %c0_32] : memref<1x128xf32, #tpu.memory_space<vmem>>, vector<1x128xf32>
    %48 = vector.broadcast %47 : vector<1x128xf32> to vector<8x128xf32>
    %49 = arith.addf %46, %48 : vector<8x128xf32>
    %50 = tpu.iota {dimensions = array<i32: 1>} : vector<8x128xi32>
    %c5_i32 = arith.constant 5 : i32
    %51 = vector.broadcast %c5_i32 : i32 to vector<8x128xi32>
    %52 = arith.cmpi slt, %50, %51 : vector<8x128xi32>
    %cst_33 = arith.constant 0xFF800000 : f32
    %53 = vector.broadcast %cst_33 : f32 to vector<8x128xf32>
    %54 = arith.select %52, %49, %53 : vector<8x128xi1>, vector<8x128xf32>
    %cst_34 = arith.constant dense<0xFF800000> : vector<8xf32>
    %55 = vector.multi_reduction <maximumf>, %54, %cst_34 [1] : vector<8x128xf32> to vector<8xf32>
    %56 = vector.shape_cast %55 : vector<8xf32> to vector<8x1xf32>
    %57 = vector.broadcast %56 : vector<8x1xf32> to vector<8x128xf32>
    %58 = arith.subf %54, %57 : vector<8x128xf32>
    %59 = math.exp %58 : vector<8x128xf32>
    %cst_35 = arith.constant dense<0.000000e+00> : vector<8xf32>
    %60 = vector.multi_reduction <add>, %59, %cst_35 [1] : vector<8x128xf32> to vector<8xf32>
    %61 = vector.shape_cast %60 : vector<8xf32> to vector<8x1xf32>
    %62 = tpu.reciprocal %61 {approx = true} : vector<8x1xf32> -> vector<8x1xf32>
    %63 = vector.broadcast %62 : vector<8x1xf32> to vector<8x128xf32>
    %64 = arith.mulf %59, %63 : vector<8x128xf32>
    %65 = arith.select %52, %64, %49 : vector<8x128xi1>, vector<8x128xf32>
    %c0_36 = arith.constant 0 : index
    %c0_37 = arith.constant 0 : index
    %66 = vector.load %arg13[%c0_36, %c0_37] : memref<8x128xf32, #tpu.memory_space<vmem>>, vector<8x128xf32>
    tpu.vector_store %arg13[%c0_36, %c0_37], %65 {strides = array<i32>} : memref<8x128xf32, #tpu.memory_space<vmem>>, vector<8x128xf32>,
    return
  }
  func.func @transform_0(%arg0: i32) -> (i32, i32) {
    %c0_i32 = arith.constant 0 : i32
    %c0_i32_0 = arith.constant 0 : i32
    return %arg0, %c0_i32 : i32, i32
  }
  func.func @transform_1(%arg0: i32) -> (i32, i32) {
    %c0_i32 = arith.constant 0 : i32
    %c0_i32_0 = arith.constant 0 : i32
    %c0_i32_1 = arith.constant 0 : i32
    return %c0_i32, %c0_i32_0 : i32, i32
  }
  func.func @transform_2(%arg0: i32) -> (i32, i32) {
    %c0_i32 = arith.constant 0 : i32
    %c0_i32_0 = arith.constant 0 : i32
    %c0_i32_1 = arith.constant 0 : i32
    return %c0_i32, %c0_i32_0 : i32, i32
  }
  func.func @transform_3(%arg0: i32) -> (i32, i32) {
    %c0_i32 = arith.constant 0 : i32
    %c0_i32_0 = arith.constant 0 : i32
    %c0_i32_1 = arith.constant 0 : i32
    return %c0_i32, %c0_i32_0 : i32, i32
  }
  func.func @transform_4(%arg0: i32) -> (i32, i32) {
    %c0_i32 = arith.constant 0 : i32
    %c0_i32_0 = arith.constant 0 : i32
    %c0_i32_1 = arith.constant 0 : i32
    return %c0_i32, %c0_i32_0 : i32, i32
  }
  func.func @transform_5(%arg0: i32) -> (i32, i32) {
    %c0_i32 = arith.constant 0 : i32
    %c0_i32_0 = arith.constant 0 : i32
    %c0_i32_1 = arith.constant 0 : i32
    return %c0_i32, %c0_i32_0 : i32, i32
  }
  func.func @transform_6(%arg0: i32) -> (i32, i32) {
    %c0_i32 = arith.constant 0 : i32
    %c0_i32_0 = arith.constant 0 : i32
    %c0_i32_1 = arith.constant 0 : i32
    return %c0_i32, %c0_i32_0 : i32, i32
  }
  func.func @transform_7(%arg0: i32) -> (i32, i32) {
    %c0_i32 = arith.constant 0 : i32
    %c0_i32_0 = arith.constant 0 : i32
    %c0_i32_1 = arith.constant 0 : i32
    return %c0_i32, %c0_i32_0 : i32, i32
  }
  func.func @transform_8(%arg0: i32) -> (i32, i32) {
    %c0_i32 = arith.constant 0 : i32
    %c0_i32_0 = arith.constant 0 : i32
    %c0_i32_1 = arith.constant 0 : i32
    return %c0_i32, %c0_i32_0 : i32, i32
  }
  func.func @transform_9(%arg0: i32) -> (i32, i32) {
    %c0_i32 = arith.constant 0 : i32
    %c0_i32_0 = arith.constant 0 : i32
    %c0_i32_1 = arith.constant 0 : i32
    return %c0_i32, %c0_i32_0 : i32, i32
  }
  func.func @transform_10(%arg0: i32) -> (i32, i32) {
    %c0_i32 = arith.constant 0 : i32
    %c0_i32_0 = arith.constant 0 : i32
    %c0_i32_1 = arith.constant 0 : i32
    return %c0_i32, %c0_i32_0 : i32, i32
  }
  func.func @transform_11(%arg0: i32) -> (i32, i32) {
    %c0_i32 = arith.constant 0 : i32
    %c0_i32_0 = arith.constant 0 : i32
    %c0_i32_1 = arith.constant 0 : i32
    return %c0_i32, %c0_i32_0 : i32, i32
  }
  func.func @transform_12(%arg0: i32) -> (i32, i32) {
    %c0_i32 = arith.constant 0 : i32
    %c0_i32_0 = arith.constant 0 : i32
    return %arg0, %c0_i32 : i32, i32
  }
}

</mosaic_0001>

<bundles_post_ra>
// kernel: tpu_custom_call.1
= control target key start
LH: loop header
LB: loop body
LE: loop exit
PB: predicated region body
PF: predicated region fallthrough
CT: control target
= control target key end

     0   :  { %17 = vsyncpa [#allocation3], 0  ;;  %s1278_s0 = inlined_call_operand.hbm [shape: f32[8,32], index: 0, kind: input, shape index: {}]   ;;  %s1279_s1 = inlined_call_operand.hbm [shape: f32[32,32], index: 1, kind: input, shape index: {}]   ;;  %s1280_s2 = inlined_call_operand.vmem [shape: f32[1,32], index: 2, kind: input, shape index: {}]   ;;  %s1281_s3 = inlined_call_operand.vmem [shape: f32[1,32], index: 3, kind: input, shape index: {}]   ;;  %s1282_s4 = inlined_call_operand.hbm [shape: bf16[32,128], index: 4, kind: input, shape index: {}]   ;;  %s1283_s5 = inlined_call_operand.vmem [shape: f32[1,128], index: 5, kind: input, shape index: {}]   ;;  %s1284_s6 = inlined_call_operand.hbm [shape: bf16[128,128], index: 6, kind: input, shape index: {}]   ;;  %s1285_s7 = inlined_call_operand.vmem [shape: f32[1,128], index: 7, kind: input, shape index: {}]   ;;  %s1286_s8 = inlined_call_operand.hbm [shape: bf16[128,128], index: 8, kind: input, shape index: {}]   ;;  %s1287_s9 = inlined_call_operand.vmem [shape: f32[1,128], index: 9, kind: input, shape index: {}]   ;;  %s1288_s10 = inlined_call_operand.hbm [shape: bf16[128,128], index: 10, kind: input, shape index: {}]   ;;  %s1289_s11 = inlined_call_operand.vmem [shape: f32[1,128], index: 11, kind: input, shape index: {}]   ;;  %s1290_s12 = inlined_call_operand.hbm [shape: f32[8,128], index: 12, kind: output, shape index: {}]  }
   0x1   :  { %18 = vsyncpa [#allocation6], 0 }
   0x2   :  { %19 = vsyncpa [#allocation9], 0 }
   0x3   :  { %20 = vsyncpa [#allocation12], 0 }
   0x4   :  { %21 = vsyncpa [#allocation4], 0  ;;  %s1098_s21 = smov [#allocation5]  }
   0x5   :  { %s37_s22 = sshll.u32 %s1098_s21, 4  ;;  %s38_s22 = int_to_ptr.vmem [resolvable:$true] %s37_s22 }
   0x6   :  { %s956_s23 = scalar_lea.vmem %s38_s22, 512  ;;  %p961_p1 = scmp.lt.s32.totalorder %s38_s22, %s38_s22 }
   0x7   :  { %p957_p0 = scmp.ne.s32.totalorder %s38_s22, %s956_s23  ;;  %p962_p2 = scmp.lt.s32.totalorder %s956_s23, %s956_s23 }
   0x9   :  { %p963_p3 = por %p962_p2, %p961_p1 }
   0xb   :  { %p964_p4 = pnand %p963_p3, %p957_p0 }
   0xd   :  { %967 = shalt.err (!%p964_p4)
}
   0xe   :  { %s1099_s24 = smov 128   ;;  %s1100_s25 = smov 8  }
   0xf   :  { %43 = dma.hbm_to_vmem [thread:$0]  %s1279_s1, 512, %s38_s22, [#allocation6], %s1099_s24, %s1099_s24, %s1100_s25  }
  0x10   :  { %s1101_s28 = smov [#allocation8]   ;;  %s1102_s30 = smov [#allocation2]  }
  0x11   :  { %s67_s29 = sshll.u32 %s1101_s28, 4  ;;  %s28_s13 = sshll.u32 %s1102_s30, 4  ;;  %s68_s29 = int_to_ptr.vmem [resolvable:$true] %s67_s29  ;;  %s29_s13 = int_to_ptr.vmem [resolvable:$true] %s28_s13 }
  0x12   :  { %s976_s14 = scalar_lea.vmem %s68_s29, 1024  ;;  %p981_p6 = scmp.lt.s32.totalorder %s68_s29, %s68_s29 }
  0x13   :  { %p977_p5 = scmp.ne.s32.totalorder %s68_s29, %s976_s14  ;;  %p982_p7 = scmp.lt.s32.totalorder %s976_s14, %s976_s14 }
  0x15   :  { %p983_p8 = por %p982_p7, %p981_p6 }
  0x17   :  { %p984_p9 = pnand %p983_p8, %p977_p5 }
  0x19   :  { %987 = shalt.err (!%p984_p9)
}
  0x1a   :  { %s1103_s15 = smov 64   ;;  %s1104_s16 = smov 4  }
  0x1b   :  { %73 = dma.hbm_to_vmem [thread:$0]  %s1284_s6, 1024, %s68_s29, [#allocation9], %s1103_s15, %s1103_s15, %s1104_s16  }
  0x1c   :  { %s996_s1 = scalar_lea.vmem %s29_s13, 128  ;;  %p1001_p11 = scmp.lt.s32.totalorder %s29_s13, %s29_s13 }
  0x1d   :  { %p997_p10 = scmp.ne.s32.totalorder %s29_s13, %s996_s1  ;;  %p1002_p12 = scmp.lt.s32.totalorder %s996_s1, %s996_s1 }
  0x1f   :  { %p1003_p13 = por %p1002_p12, %p1001_p11 }
  0x21   :  { %p1004_p0 = pnand %p1003_p13, %p997_p10 }
  0x23   :  { %1007 = shalt.err (!%p1004_p0)
}
  0x24   :  { %31 = dma.hbm_to_vmem [thread:$0]  %s1278_s0, 128, %s29_s13, [#allocation3]  }
  0x25   :  { %s1105_s21 = smov [#allocation7]   ;;  %s1106_s23 = smov [#allocation10]  }
  0x26   :  { %s53_s22 = sshll.u32 %s1105_s21, 4  ;;  %s81_s24 = sshll.u32 %s1106_s23, 4  ;;  %s54_s22 = int_to_ptr.vmem [resolvable:$true] %s53_s22  ;;  %s82_s24 = int_to_ptr.vmem [resolvable:$true] %s81_s24 }
  0x27   :  { %s1016_s25 = scalar_lea.vmem %s54_s22, 256  ;;  %p1021_p2 = scmp.lt.s32.totalorder %s54_s22, %s54_s22 }
  0x28   :  { %p1017_p1 = scmp.ne.s32.totalorder %s54_s22, %s1016_s25  ;;  %p1022_p3 = scmp.lt.s32.totalorder %s1016_s25, %s1016_s25 }
  0x2a   :  { %p1023_p4 = por %p1022_p3, %p1021_p2 }
  0x2c   :  { %p1024_p5 = pnand %p1023_p4, %p1017_p1 }
  0x2e   :  { %1027 = shalt.err (!%p1024_p5)
}
  0x2f   :  { %59 = dma.hbm_to_vmem [thread:$0]  %s1282_s4, 256, %s54_s22, [#allocation6], %s1103_s15, %s1103_s15, %s1104_s16  }
  0x30   :  { %s1036_s0 = scalar_lea.vmem %s82_s24, 1024  ;;  %p1041_p7 = scmp.lt.s32.totalorder %s82_s24, %s82_s24 }
  0x31   :  { %p1037_p6 = scmp.ne.s32.totalorder %s82_s24, %s1036_s0  ;;  %p1042_p8 = scmp.lt.s32.totalorder %s1036_s0, %s1036_s0 }
  0x33   :  { %p1043_p9 = por %p1042_p8, %p1041_p7 }
  0x35   :  { %p1044_p10 = pnand %p1043_p9, %p1037_p6 }
  0x37   :  { %1047 = shalt.err (!%p1044_p10)
}
  0x38   :  { %87 = dma.hbm_to_vmem [thread:$0]  %s1286_s8, 1024, %s82_s24, [#allocation9], %s1103_s15, %s1103_s15, %s1104_s16  }
  0x39   :  { %s1107_s29 = smov [#allocation11]  }
  0x3a   :  { %s95_s30 = sshll.u32 %s1107_s29, 4  ;;  %s96_s30 = int_to_ptr.vmem [resolvable:$true] %s95_s30 }
  0x3b   :  { %s1056_s13 = scalar_lea.vmem %s96_s30, 1024  ;;  %p1061_p12 = scmp.lt.s32.totalorder %s96_s30, %s96_s30 }
  0x3c   :  { %p1057_p11 = scmp.ne.s32.totalorder %s96_s30, %s1056_s13  ;;  %p1062_p13 = scmp.lt.s32.totalorder %s1056_s13, %s1056_s13 }
  0x3e   :  { %p1063_p0 = por %p1062_p13, %p1061_p12 }
  0x40   :  { %p1064_p1 = pnand %p1063_p0, %p1057_p11 }
  0x42   :  { %1067 = shalt.err (!%p1064_p1)
}
  0x43   :  { %101 = dma.hbm_to_vmem [thread:$0]  %s1288_s10, 1024, %s96_s30, [#allocation12], %s1103_s15, %s1103_s15, %s1104_s16  }
  0x44   :  { %1088 = dma.done.wait [#allocation3], 128  }
  0x45   :  { %1089 = vsyncadd [#allocation3], 4294967168 }
  0x46   :  { %1090 = dma.done.wait [#allocation6], 768  }
  0x47   :  { %1091 = vsyncadd [#allocation6], 4294966528 }
  0x48   :  { %1092 = dma.done.wait [#allocation9], 2048  }
  0x49   :  { %1093 = vsyncadd [#allocation9], 4294965248 }
  0x4a   :  { %1094 = dma.done.wait [#allocation12], 1024  }
  0x4b   :  { %1095 = vsyncadd [#allocation12], 4294966272  ;;  %v1108_v0 = vmov 0.0   ;;  %vm1109_vm0 = vmmov 0   ;;  %v127_v1 = vld [vmem:[#allocation5 + $0x18] sm:$0xff]  ;;  %v126_v2 = vld [vmem:[#allocation5 + $0x10] sm:$0xff] }
  0x4c   :  { %813 = vmatprep.subr.mxu0 %v1108_v0  ;;  %821 = vmatprep.mubr.msk.f32.mxu0 %vm1109_vm0, %v1108_v0  ;;  %v125_v3 = vld [vmem:[#allocation5 + $0x8] sm:$0xff]  ;;  %vm128_vm1 = vcmask 261120   ;;  %v124_v4 = vld [vmem:[#allocation5] sm:$0xff]  ;;  %v123_v5 = vld [vmem:[#allocation2] sm:$0xff] }
  0x4d   :  { %843 = vmatprep.subr.bf16.mxu1 %v1108_v0  ;;  %859 = vmatprep.mubr.msk.bf16.mxu1 %vm1109_vm0, %v1108_v0  ;;  %v202_v6 = vmul.f32 %v123_v5, %v123_v5  ;;  %v916_v7 = vld [vmem:[#allocation7 + $0x8] sm:$0xff]   ;;  %v917_v8 = vld [vmem:[#allocation7] sm:$0xff]   ;;  %v920_v11 = vld [vmem:[#allocation8 + $0x28] sm:$0xff]  }
  0x4e   :  { %814 = vmatpush3.msra.mxu0 %v127_v1  ;;  %v918_v9 = vld [vmem:[#allocation8 + $0x38] sm:$0xff]   ;;  %v919_v10 = vld [vmem:[#allocation8 + $0x30] sm:$0xff]   ;;  %v921_v12 = vld [vmem:[#allocation8 + $0x20] sm:$0xff]  }
  0x4f   :  { %815 = vmatprep.subr.mxu0 %v1108_v0  ;;  %844 = vmatpush3.bf16.msra.mxu1 %v918_v9  ;;  %v922_v13 = vld [vmem:[#allocation8 + $0x18] sm:$0xff]   ;;  %v923_v14 = vld [vmem:[#allocation8 + $0x10] sm:$0xff]   ;;  %v740_v25 = vld [vmem:[%s1280_s2] ss:$0 sm:$0xff] }
  0x50   :  { %816 = vmatpush3.msra.mxu0 %v126_v2  ;;  %845 = vmatprep.subr.bf16.mxu1 %v1108_v0  ;;  %v741_v27 = vld [vmem:[%s1281_s3] ss:$0 sm:$0xff]  ;;  %v925_v32 = vld [vmem:[#allocation8] sm:$0xff]   ;;  %v926_v33 = vld [vmem:[#allocation10 + $0x38] sm:$0xff]  }
  0x51   :  { %817 = vmatprep.subr.mxu0 %v1108_v0  ;;  %v924_v31 = vld [vmem:[#allocation8 + $0x8] sm:$0xff]   ;;  %v927_v34 = vld [vmem:[#allocation10 + $0x30] sm:$0xff]   ;;  %v929_v36 = vld [vmem:[#allocation10 + $0x20] sm:$0xff]  }
  0x52   :  { %818 = vmatpush3.msra.mxu0 %v125_v3  ;;  %v928_v35 = vld [vmem:[#allocation10 + $0x28] sm:$0xff]   ;;  %v930_v37 = vld [vmem:[#allocation10 + $0x18] sm:$0xff]   ;;  %v931_v38 = vld [vmem:[#allocation10 + $0x10] sm:$0xff]  }
  0x53   :  { %819 = vmatprep.subr.mxu0 %v1108_v0  ;;  %846 = vmatpush3.bf16.msra.mxu1 %v919_v10  ;;  %v742_v39 = vld [vmem:[%s1283_s5] ss:$0 sm:$0xff]  ;;  %v933_v48 = vld [vmem:[#allocation10] sm:$0xff]   ;;  %v934_v49 = vld [vmem:[#allocation11 + $0x38] sm:$0xff]   ;;  %v705_v10 = vlaneseq }
  0x54   :  { %820 = vmatpush3.msra.mxu0 %v124_v4  ;;  %847 = vmatprep.subr.bf16.mxu1 %v1108_v0  ;;  %v932_v47 = vld [vmem:[#allocation10 + $0x8] sm:$0xff]   ;;  %v935_v50 = vld [vmem:[#allocation11 + $0x30] sm:$0xff]   ;;  %v937_v52 = vld [vmem:[#allocation11 + $0x20] sm:$0xff]  }
  0x55   :  { %822 = vmatmul.mubr.msk.f32.vlgmr.msra.gmra.mxu0 %vm128_vm1, %v123_v5  ;;  %824 = vmatprep.subr.mxu0 %v1108_v0  ;;  %v936_v51 = vld [vmem:[#allocation11 + $0x28] sm:$0xff]   ;;  %v938_v53 = vld [vmem:[#allocation11 + $0x18] sm:$0xff]   ;;  %v939_v54 = vld [vmem:[#allocation11 + $0x10] sm:$0xff]  }
  0x56   :  { %825 = vmatpush3.msra.mxu0 %v127_v1  ;;  %832 = vmatprep.mubr.msk.f32.mxu0 %vm1109_vm0, %v1108_v0  ;;  %v746_v55 = vld [vmem:[%s1285_s7] ss:$0 sm:$0xff]  ;;  %v941_v1 = vld [vmem:[#allocation11] sm:$0xff]  }
  0x57   :  { %826 = vmatprep.subr.mxu0 %v1108_v0  ;;  %848 = vmatpush3.bf16.msra.mxu1 %v920_v11  ;;  %v940_v63 = vld [vmem:[#allocation11 + $0x8] sm:$0xff]   ;;  %v706_v11 = vand.u32 127, %v705_v10 }
  0x58   :  { %827 = vmatpush3.msra.mxu0 %v126_v2  ;;  %849 = vmatprep.subr.bf16.mxu1 %v1108_v0  ;;  %v755_v2 = vld [vmem:[%s1287_s9] ss:$0 sm:$0xff]  ;;  %s1110_s9 = smov [#allocation13]  }
  0x59   :  { %828 = vmatprep.subr.mxu0 %v1108_v0  ;;  %vm707_vm2 = vcmp.lt.s32.totalorder %v706_v11, 5  ;;  %s726_s20 = sshll.u32 %s1110_s9, 4  ;;  %s727_s20 = int_to_ptr.vmem [resolvable:$true] %s726_s20 }
  0x5a   :  { %829 = vmatpush3.msra.mxu0 %v125_v3  ;;  %p1073_p3 = scmp.lt.s32.totalorder %s727_s20, %s727_s20 }
  0x5b   :  { %830 = vmatprep.subr.mxu0 %v1108_v0  ;;  %850 = vmatpush3.bf16.msra.mxu1 %v921_v12 }
  0x5c   :  { %831 = vmatpush3.msra.mxu0 %v124_v4  ;;  %851 = vmatprep.subr.bf16.mxu1 %v1108_v0 }
  0x5d   :  { %833 = vmatmul.mubr.msk.f32.vlgmr.msra.gmra.mxu0 %vm128_vm1, %v202_v6  ;;  %835 = vmatprep.subr.bf16.mxu0 %v1108_v0 }
  0x5e   :  { %839 = vmatprep.mubr.msk.bf16.mxu0 %vm1109_vm0, %v1108_v0  ;;  %836 = vmatpush3.bf16.msra.mxu0 %v916_v7 }
  0x5f   :  { %837 = vmatprep.subr.bf16.mxu0 %v1108_v0  ;;  %852 = vmatpush3.bf16.msra.mxu1 %v922_v13 }
  0x60   :  { %853 = vmatprep.subr.bf16.mxu1 %v1108_v0 }
  0x62   :  { %838 = vmatpush3.bf16.msra.mxu0 %v917_v8 }
  0x63   :  { %863 = vmatprep.subr.bf16.mxu0 %v1108_v0  ;;  %854 = vmatpush3.bf16.msra.mxu1 %v923_v14 }
  0x64   :  { %855 = vmatprep.subr.bf16.mxu1 %v1108_v0 }
  0x67   :  { %856 = vmatpush3.bf16.msra.mxu1 %v924_v31 }
  0x68   :  { %857 = vmatprep.subr.bf16.mxu1 %v1108_v0 }
  0x6b   :  { %858 = vmatpush3.bf16.msra.mxu1 %v925_v32 }
  0x6c   :  { %883 = vmatprep.subr.bf16.mxu1 %v1108_v0 }
 0x115   :  { %v198_v15 = vpop.f32.mrf.mxu0 }
 0x116   :  { %v276_v17 = vmul.f32 %v198_v15, %v198_v15  ;;  %v279_v23 = vsub.f32 %v123_v5, %v198_v15 }
 0x117   :  { %v823_v16 = vpop.f32.mrf.mxu0 }
 0x11d   :  { %v272_v18 = vpop.f32.mrf.mxu0 }
 0x11e   :  { %v277_v19 = vsub.f32 %v272_v18, %v276_v17 }
 0x11f   :  { %v834_v20 = vpop.f32.mrf.mxu0 }
 0x120   :  { %v278_v21 = vmax.f32 %v277_v19, 0.0 }
 0x122   :  { %v280_v22 = vadd.f32 1e-05, %v278_v21 }
 0x124   :  { %942 = vrsqrt.f32 %v280_v22 }
 0x131   :  { %v943_v24 = vpop.eup %942 }
 0x132   :  { %v282_v26 = vmul.f32 %v943_v24, %v279_v23 }
 0x134   :  { %v290_v28 = vmul.f32 %v740_v25, %v282_v26 }
 0x136   :  { %v298_v29 = vadd.f32 %v741_v27, %v290_v28 }
 0x138   :  { %v299_v30 = vpack.c.bf16 %v298_v29, %v298_v29 }
 0x13a   :  { %840 = vmatmul.mubr.msk.bf16.vlgmr.msra.gmra.mxu0 %vm128_vm1, %v299_v30 }
 0x13b   :  { %879 = vmatprep.mubr.msk.bf16.mxu0 %vm1109_vm0, %v1108_v0  ;;  %864 = vmatpush3.bf16.msra.mxu0 %v926_v33 }
 0x13c   :  { %865 = vmatprep.subr.bf16.mxu0 %v1108_v0 }
 0x13f   :  { %866 = vmatpush3.bf16.msra.mxu0 %v927_v34 }
 0x140   :  { %867 = vmatprep.subr.bf16.mxu0 %v1108_v0 }
 0x143   :  { %868 = vmatpush3.bf16.msra.mxu0 %v928_v35 }
 0x144   :  { %869 = vmatprep.subr.bf16.mxu0 %v1108_v0 }
 0x147   :  { %870 = vmatpush3.bf16.msra.mxu0 %v929_v36 }
 0x148   :  { %871 = vmatprep.subr.bf16.mxu0 %v1108_v0 }
 0x14b   :  { %872 = vmatpush3.bf16.msra.mxu0 %v930_v37 }
 0x14c   :  { %873 = vmatprep.subr.bf16.mxu0 %v1108_v0 }
 0x14f   :  { %874 = vmatpush3.bf16.msra.mxu0 %v931_v38 }
 0x150   :  { %875 = vmatprep.subr.bf16.mxu0 %v1108_v0 }
 0x153   :  { %876 = vmatpush3.bf16.msra.mxu0 %v932_v47 }
 0x154   :  { %877 = vmatprep.subr.bf16.mxu0 %v1108_v0 }
 0x157   :  { %878 = vmatpush3.bf16.msra.mxu0 %v933_v48 }
 0x1fa   :  { %v360_v40 = vpop.f32.mrf.mxu0 }
 0x1fb   :  { %v361_v41 = vadd.f32 %v742_v39, %v360_v40 }
 0x1fc   :  { %v841_v42 = vpop.f32.mrf.mxu0 }
 0x1fd   :  { %v366_v43 = vmax.f32 %v361_v41, 0.0 }
 0x1fe   :  { %v363_v44 = vpop.f32.mrf.mxu0 }
 0x1ff   :  { %v367_v45 = vpack.c.bf16 %v366_v43, %v366_v43 }
 0x200   :  { %v842_v46 = vpop.f32.mrf.mxu0 }
 0x201   :  { %860 = vmatmul.mubr.bf16.vlgmr.msra.gmra.mxu1 %v367_v45 }
 0x202   :  { %899 = vmatprep.mubr.msk.bf16.mxu1 %vm1109_vm0, %v1108_v0  ;;  %884 = vmatpush3.bf16.msra.mxu1 %v934_v49 }
 0x203   :  { %885 = vmatprep.subr.bf16.mxu1 %v1108_v0 }
 0x206   :  { %886 = vmatpush3.bf16.msra.mxu1 %v935_v50 }
 0x207   :  { %887 = vmatprep.subr.bf16.mxu1 %v1108_v0 }
 0x20a   :  { %888 = vmatpush3.bf16.msra.mxu1 %v936_v51 }
 0x20b   :  { %889 = vmatprep.subr.bf16.mxu1 %v1108_v0 }
 0x20e   :  { %890 = vmatpush3.bf16.msra.mxu1 %v937_v52 }
 0x20f   :  { %891 = vmatprep.subr.bf16.mxu1 %v1108_v0 }
 0x212   :  { %892 = vmatpush3.bf16.msra.mxu1 %v938_v53 }
 0x213   :  { %893 = vmatprep.subr.bf16.mxu1 %v1108_v0 }
 0x216   :  { %894 = vmatpush3.bf16.msra.mxu1 %v939_v54 }
 0x217   :  { %895 = vmatprep.subr.bf16.mxu1 %v1108_v0 }
 0x21a   :  { %896 = vmatpush3.bf16.msra.mxu1 %v940_v63 }
 0x21b   :  { %897 = vmatprep.subr.bf16.mxu1 %v1108_v0  ;;  %v764_v0 = vld [vmem:[%s1289_s11] ss:$0 sm:$0xff]  ;;  %s1068_s11 = scalar_lea.vmem %s727_s20, 128 }
 0x21c   :  { %p1069_p2 = scmp.ne.s32.totalorder %s727_s20, %s1068_s11  ;;  %p1074_p4 = scmp.lt.s32.totalorder %s1068_s11, %s1068_s11 }
 0x21e   :  { %898 = vmatpush3.bf16.msra.mxu1 %v941_v1  ;;  %p1075_p5 = por %p1074_p4, %p1073_p3 }
 0x220   :  { %p1076_p6 = pnand %p1075_p5, %p1069_p2 }
 0x2c1   :  { %v473_v56 = vpop.f32.mrf.mxu1 }
 0x2c2   :  { %v474_v57 = vadd.f32 %v746_v55, %v473_v56 }
 0x2c3   :  { %v861_v58 = vpop.f32.mrf.mxu1 }
 0x2c4   :  { %v479_v59 = vmax.f32 %v474_v57, 0.0 }
 0x2c5   :  { %v476_v60 = vpop.f32.mrf.mxu1 }
 0x2c6   :  { %v480_v61 = vpack.c.bf16 %v479_v59, %v479_v59 }
 0x2c7   :  { %v862_v62 = vpop.f32.mrf.mxu1 }
 0x2c8   :  { %880 = vmatmul.mubr.bf16.vlgmr.msra.gmra.mxu0 %v480_v61 }
 0x388   :  { %v586_v3 = vpop.f32.mrf.mxu0 }
 0x389   :  { %v587_v4 = vadd.f32 %v755_v2, %v586_v3 }
 0x38a   :  { %v881_v5 = vpop.f32.mrf.mxu0 }
 0x38b   :  { %v592_v6 = vmax.f32 %v587_v4, 0.0 }
 0x38c   :  { %v589_v7 = vpop.f32.mrf.mxu0 }
 0x38d   :  { %v593_v8 = vpack.c.bf16 %v592_v6, %v592_v6 }
 0x38e   :  { %v882_v9 = vpop.f32.mrf.mxu0 }
 0x38f   :  { %900 = vmatmul.mubr.bf16.vlgmr.msra.gmra.mxu1 %v593_v8 }
 0x44f   :  { %v699_v12 = vpop.f32.mrf.mxu1 }
 0x450   :  { %v700_v13 = vadd.f32 %v764_v0, %v699_v12 }
 0x451   :  { %v901_v14 = vpop.f32.mrf.mxu1 }
 0x452   :  { %v708_v15 = vsel %vm707_vm2, %v700_v13, -inf }
 0x453   :  { %709 = vmax.xlane.f32.xlu0 %v708_v15  ;;  %v702_v16 = vpop.f32.mrf.mxu1 }
 0x455   :  { %v902_v17 = vpop.f32.mrf.mxu1 }
 0x4dc   :  { %v710_v18 = vpop.xlane.xlu0 %709 }
 0x4dd   :  { %v711_v19 = vsub.f32 %v708_v15, %v710_v18 }
 0x4df   :  { %v712_v20 = vmul.f32 1.442695, %v711_v19 }
 0x4e1   :  { %944 = vpow2.f32 %v712_v20 }
 0x4ee   :  { %v945_v21 = vpop.eup %944 }
 0x4ef   :  { %714 = vadd.xlane.f32.xlu0 %v945_v21 }
 0x578   :  { %v715_v22 = vpop.xlane.xlu0 %714 }
 0x579   :  { %946 = vrcp.f32 %v715_v22 }
 0x586   :  { %v947_v23 = vpop.eup %946 }
 0x587   :  { %v717_v24 = vmul.f32 %v947_v23, %v945_v21 }
 0x589   :  { %v718_v25 = vsel %vm707_vm2, %v717_v24, %v700_v13 }
 0x58a   :  { %719 = vst [vmem:[#allocation13] sm:$0xff] %v718_v25 }
 0x58b   :  { %1079 = shalt.err (!%p1076_p6)
}
 0x58c   :  { %729 = dma.vmem_to_hbm [thread:$0]  %s727_s20, 128, %s1290_s12, [#allocation4]  }
 0x58d   :  { %1096 = dma.done.wait [#allocation4], 128  }
 0x58e   :  { %1097 = vsyncadd [#allocation4], 4294967168 }
 0x58f   :  { %733 = vsyncpa [#allocation3], 1 }
 0x590   :  { %734 = vsyncpa [#allocation6], 1 }
 0x591   :  { %735 = vsyncpa [#allocation9], 1 }
 0x592   :  { %736 = vsyncpa [#allocation12], 1 }
 0x593   :  { %737 = vsyncpa [#allocation4], 1 }

</bundles_post_ra>
